<compile_context>
chip_gen: v6e
topology: v6e:2x2x1
jax: 0.10.0
libtpu: 0.0.40
codegen_flags: <defaults>
</compile_context>

<pallas_src>
import jax
import jax.numpy as jnp
from jax.experimental import pallas as pl
from jax.experimental.pallas import tpu as pltpu


def _affine_flow_kernel(z_ref, s_ref, t_ref, x_ref):
    # z_ref: (TB, TF)  batch tile of input configurations
    # s_ref: (1,  TF)  per-site log-scale parameter tile
    # t_ref: (1,  TF)  per-site shift parameter tile
    # x_ref: (TB, TF)  batch tile of transformed configurations
    z = z_ref[...].astype(jnp.float32)
    s = s_ref[...].astype(jnp.float32)
    t = t_ref[...].astype(jnp.float32)
    # Pure streaming FMA on the VPU; exp((1,TF)) rides the EUP slot (free
    # filler while HBM-bound, so no need to precompute exp(s) in the wrapper).
    x_ref[...] = (jnp.exp(s) * z + t).astype(x_ref.dtype)


def transformation_forward(
    z,
    s,
    t,
    *,
    tile_bytes=6 * 1024 * 1024,
    vmem_limit_bytes=32 * 1024 * 1024,
):
    """Forward pass of the affine Transformation.

    Parameters
    ----------
    z : (B, C, H, W) configurations (NCHW, matching PyTorch). f32 or bf16.
    s : (C, H, W)    per-site log-scale parameter
    t : (C, H, W)    per-site shift parameter

    Returns
    -------
    x     : (B, C, H, W) transformed configurations (same dtype as z)
    log_J : (B,)         log Jacobian determinant per sample
    """
    B, C, H, W = z.shape
    F = C * H * W
    itemsize = jnp.dtype(z.dtype).itemsize

    # Flat (B, F) views — reshapes only, no padding / extra HBM copies.
    z2 = z.reshape(B, F)
    s2 = s.reshape(1, F)
    t2 = t.reshape(1, F)

    row_bytes = F * itemsize

    # --- choose (TB, TF) tile -------------------------------------------------
    if 8 * row_bytes <= tile_bytes:
        # Full feature rows fit: tile along batch only (TF = full F is legal
        # regardless of F % 128; partial trailing vreg is just a masked store).
        TF = F
        TB = max(8, (tile_bytes // row_bytes) // 8 * 8)
    else:
        # Very large lattice: block the feature dim too (128-aligned) so the
        # 4-buffer working set stays within the scoped-VMEM budget.
        TF = max(128, (tile_bytes // (8 * itemsize)) // 128 * 128)
        TB = 8

    if B < 8:
        TB = B  # block equal to full batch dim (legal even if not %8)
    else:
        # Keep >= ~4 batch grid steps when B allows, so the "parallel" axis
        # load-balances across v7x's two TensorCores.
        min_steps = 4
        tb_cap = max(8, ((-(-B // min_steps)) + 7) // 8 * 8)
        TB = min(TB, tb_cap)

    grid = (pl.cdiv(B, TB), pl.cdiv(F, TF))

    x2 = pl.pallas_call(
        _affine_flow_kernel,
        out_shape=jax.ShapeDtypeStruct((B, F), z.dtype),
        grid=grid,
        in_specs=[
            pl.BlockSpec((TB, TF), lambda i, j: (i, j)),  # z: streamed
            pl.BlockSpec((1, TF), lambda i, j: (0, j)),   # s: resident per j
            pl.BlockSpec((1, TF), lambda i, j: (0, j)),   # t: resident per j
        ],
        out_specs=pl.BlockSpec((TB, TF), lambda i, j: (i, j)),
        compiler_params=pltpu.CompilerParams(
            dimension_semantics=("parallel", "parallel"),
            vmem_limit_bytes=vmem_limit_bytes,
        ),
    )(z2, s2, t2)

    x = x2.reshape(B, C, H, W)

    # log|det J| = sum(s): independent of z and batch-constant, so it is
    # computed once here instead of as a lane-width-1 masked-store kernel output.
    log_J = jnp.broadcast_to(jnp.sum(s.astype(jnp.float32)), (B,))
    return x, log_J


if __name__ == "__main__":
    B, C, H, W = 2, 4, 16, 16
    key = jax.random.PRNGKey(0)
    z = jax.random.normal(key, (B, C, H, W), dtype=jnp.float32)

    # Deterministic parameter init (synthetic; shapes implied by per-site flow).
    F = C * H * W
    s = (0.05 * jnp.sin(jnp.arange(F, dtype=jnp.float32))).reshape(C, H, W)
    t = (0.10 * jnp.cos(jnp.arange(F, dtype=jnp.float32))).reshape(C, H, W)

    x, log_J = jax.jit(transformation_forward)(z, s, t)
    jax.block_until_ready((x, log_J))

    # Reference check in plain JAX.
    x_ref = jnp.exp(s)[None] * z + t[None]
    logj_ref = jnp.broadcast_to(jnp.sum(s), (B,))
    assert x.shape == (B, C, H, W) and log_J.shape == (B,)
    assert jnp.allclose(x, x_ref, atol=1e-5, rtol=1e-5)
    assert jnp.allclose(log_J, logj_ref, atol=1e-5, rtol=1e-5)

    print("KERNEL_OK")
</pallas_src>

<mosaic_0001>
module attributes {stable_mosaic.version = 11 : i64} {
  func.func @_affine_flow_kernel(%arg0: i32, %arg1: i32, %arg2: memref<2x1024xf32, #tpu.memory_space<vmem>>, %arg3: memref<1x1024xf32, #tpu.memory_space<vmem>>, %arg4: memref<1x1024xf32, #tpu.memory_space<vmem>>, %arg5: memref<2x1024xf32, #tpu.memory_space<vmem>>) attributes {dimension_semantics = [#tpu.dimension_semantics<parallel>, #tpu.dimension_semantics<parallel>], iteration_bounds = array<i64: 1, 1>, scalar_prefetch = 0 : i64, scratch_operands = 0 : i64, tpu.core_type = #tpu.core_type<tc>, window_params = [{transform_indices = @transform_0, window_bounds = array<i64: 2, 1024>}, {transform_indices = @transform_1, window_bounds = array<i64: 1, 1024>}, {transform_indices = @transform_2, window_bounds = array<i64: 1, 1024>}, {transform_indices = @transform_3, window_bounds = array<i64: 2, 1024>}]} {
    %c0 = arith.constant 0 : index
    %c0_0 = arith.constant 0 : index
    %0 = vector.load %arg2[%c0, %c0_0] : memref<2x1024xf32, #tpu.memory_space<vmem>>, vector<2x1024xf32>
    %c0_1 = arith.constant 0 : index
    %c0_2 = arith.constant 0 : index
    %1 = vector.load %arg3[%c0_1, %c0_2] : memref<1x1024xf32, #tpu.memory_space<vmem>>, vector<1x1024xf32>
    %c0_3 = arith.constant 0 : index
    %c0_4 = arith.constant 0 : index
    %2 = vector.load %arg4[%c0_3, %c0_4] : memref<1x1024xf32, #tpu.memory_space<vmem>>, vector<1x1024xf32>
    %3 = math.exp %1 : vector<1x1024xf32>
    %4 = vector.broadcast %3 : vector<1x1024xf32> to vector<2x1024xf32>
    %5 = arith.mulf %4, %0 : vector<2x1024xf32>
    %6 = vector.broadcast %2 : vector<1x1024xf32> to vector<2x1024xf32>
    %7 = arith.addf %5, %6 : vector<2x1024xf32>
    %c0_5 = arith.constant 0 : index
    %c0_6 = arith.constant 0 : index
    %8 = vector.load %arg5[%c0_5, %c0_6] : memref<2x1024xf32, #tpu.memory_space<vmem>>, vector<2x1024xf32>
    tpu.vector_store %arg5[%c0_5, %c0_6], %7 {strides = array<i32>} : memref<2x1024xf32, #tpu.memory_space<vmem>>, vector<2x1024xf32>,
    return
  }
  func.func @transform_0(%arg0: i32, %arg1: i32) -> (i32, i32) {
    %c0_i32 = arith.constant 0 : i32
    return %arg0, %arg1 : i32, i32
  }
  func.func @transform_1(%arg0: i32, %arg1: i32) -> (i32, i32) {
    %c0_i32 = arith.constant 0 : i32
    %c0_i32_0 = arith.constant 0 : i32
    return %c0_i32, %arg1 : i32, i32
  }
  func.func @transform_2(%arg0: i32, %arg1: i32) -> (i32, i32) {
    %c0_i32 = arith.constant 0 : i32
    %c0_i32_0 = arith.constant 0 : i32
    return %c0_i32, %arg1 : i32, i32
  }
  func.func @transform_3(%arg0: i32, %arg1: i32) -> (i32, i32) {
    %c0_i32 = arith.constant 0 : i32
    return %arg0, %arg1 : i32, i32
  }
}

</mosaic_0001>

<bundles_post_ra>
// kernel: transformation_forward.1
= control target key start
LH: loop header
LB: loop body
LE: loop exit
PB: predicated region body
PF: predicated region fallthrough
CT: control target
= control target key end

     0   :  { %v21_v0 = vlaneseq  ;;  %v217_v2 = vmov 1983009808   ;;  %s256_s1 = inlined_call_operand.vmem [shape: f32[1,1024], index: 1, kind: input, shape index: {}]   ;;  %s257_s0 = inlined_call_operand.vmem [shape: f32[2,1024], index: 0, kind: input, shape index: {}]   ;;  %s258_s2 = inlined_call_operand.vmem [shape: f32[1,1024], index: 2, kind: input, shape index: {}]   ;;  %s259_s3 = inlined_call_operand.vmem [shape: f32[2,1024], index: 3, kind: output, shape index: {}]  }
   0x1   :  { %v16_v1 = vld [vmem:[%s256_s1] sm:$0xff]  ;;  %v65_v3 = vunpack.c.l.s4 %v217_v2  ;;  %v15_v8 = vld [vmem:[%s257_s0 + $0x8] sm:$0xff] }
   0x2   :  { %v18_v4 = vmul.f32 1.442695, %v16_v1  ;;  %v22_v5 = vshrl.u32 %v21_v0, 7  ;;  %v14_v7 = vld [vmem:[%s257_s0] sm:$0xff]  ;;  %v80_v11 = vcombine.high %v15_v8, %v15_v8 }
   0x3   :  { %v66_v6 = vunpack.c.0.s8 %v65_v3  ;;  %v63_v9 = vcombine.high %v14_v7, %v14_v7  ;;  %v17_v12 = vld [vmem:[%s258_s2] sm:$0xff] }
   0x4   :  { %215 = vpow2.f32 %v18_v4  ;;  %v23_v13 = vsub.s32 0, %v22_v5  ;;  %v27_v14 = vsub.s32 1, %v22_v5  ;;  %v31_v17 = vsub.s32 2, %v22_v5 }
   0x5   :  { %v69_v10 = vsub.s32 %v66_v6, %v22_v5  ;;  %v35_v18 = vsub.s32 3, %v22_v5  ;;  %v39_v23 = vsub.s32 4, %v22_v5  ;;  %v43_v24 = vsub.s32 5, %v22_v5 }
   0x6   :  { %v117_v21 = vrot.slane %v17_v12, %v23_v13  ;;  %v121_v22 = vrot.slane %v17_v12, %v27_v14  ;;  %v125_v25 = vrot.slane %v17_v12, %v31_v17  ;;  %v47_v27 = vsub.s32 6, %v22_v5 }
   0x7   :  { %v70_v15 = vrot.slane %v14_v7, %v69_v10  ;;  %v77_v16 = vrot.slane %v63_v9, %v69_v10  ;;  %v87_v19 = vrot.slane %v15_v8, %v69_v10  ;;  %v94_v20 = vrot.slane %v80_v11, %v69_v10 }
   0x8   :  { %v129_v26 = vrot.slane %v17_v12, %v35_v18  ;;  %v51_v28 = vsub.s32 7, %v22_v5  ;;  %v133_v31 = vrot.slane %v17_v12, %v39_v23  ;;  %v137_v32 = vrot.slane %v17_v12, %v43_v24 }
   0x9   :  { %v78_v29 = vcombine.high %v70_v15, %v70_v15  ;;  %v79_v30 = vcombine.high %v77_v16, %v77_v16  ;;  %v95_v34 = vcombine.high %v87_v19, %v87_v19  ;;  %v96_v35 = vcombine.high %v94_v20, %v94_v20 }
   0xa   :  { %v141_v36 = vrot.slane %v17_v12, %v47_v27  ;;  %v145_v37 = vrot.slane %v17_v12, %v51_v28 }
  0x11   :  { %v216_v33 = vpop.eup %215 }
  0x12   :  { %v24_v38 = vrot.slane %v216_v33, %v23_v13  ;;  %v28_v39 = vrot.slane %v216_v33, %v27_v14  ;;  %v32_v40 = vrot.slane %v216_v33, %v31_v17  ;;  %v36_v41 = vrot.slane %v216_v33, %v35_v18 }
  0x13   :  { %v40_v42 = vrot.slane %v216_v33, %v39_v23  ;;  %v44_v43 = vrot.slane %v216_v33, %v43_v24  ;;  %v48_v44 = vrot.slane %v216_v33, %v47_v27  ;;  %v52_v45 = vrot.slane %v216_v33, %v51_v28 }
  0x14   :  { %v105_v46 = vmul.f32 %v70_v15, %v24_v38  ;;  %v106_v47 = vmul.f32 %v78_v29, %v28_v39  ;;  %v107_v48 = vmul.f32 %v77_v16, %v32_v40  ;;  %v108_v49 = vmul.f32 %v79_v30, %v36_v41 }
  0x15   :  { %v109_v50 = vmul.f32 %v87_v19, %v40_v42  ;;  %v110_v51 = vmul.f32 %v95_v34, %v44_v43  ;;  %v111_v52 = vmul.f32 %v94_v20, %v48_v44  ;;  %v112_v53 = vmul.f32 %v96_v35, %v52_v45 }
  0x16   :  { %v154_v54 = vadd.f32 %v117_v21, %v105_v46  ;;  %v155_v55 = vadd.f32 %v121_v22, %v106_v47  ;;  %v156_v56 = vadd.f32 %v125_v25, %v107_v48  ;;  %v157_v57 = vadd.f32 %v129_v26, %v108_v49 }
  0x17   :  { %v158_v58 = vadd.f32 %v133_v31, %v109_v50  ;;  %v159_v59 = vadd.f32 %v137_v32, %v110_v51  ;;  %v160_v60 = vadd.f32 %v141_v36, %v111_v52  ;;  %v161_v61 = vadd.f32 %v145_v37, %v112_v53 }
  0x18   :  { %v170_v62 = vcombine.low %v154_v54, %v155_v55  ;;  %v171_v63 = vcombine.low %v156_v56, %v157_v57 }
  0x19   :  { %v187_v0 = vcombine.low %v158_v58, %v159_v59  ;;  %v188_v1 = vcombine.low %v160_v60, %v161_v61 }
  0x1a   :  { %v178_v2 = vrot.slane %v170_v62, %v69_v10  ;;  %v185_v3 = vrot.slane %v171_v63, %v69_v10 }
  0x1b   :  { %v195_v4 = vrot.slane %v187_v0, %v69_v10  ;;  %v202_v5 = vrot.slane %v188_v1, %v69_v10 }
  0x1c   :  { %v186_v6 = vcombine.low %v178_v2, %v185_v3 }
  0x1d   :  { %v203_v7 = vcombine.low %v195_v4, %v202_v5 }
  0x1e   :  { %206 = vst [vmem:[%s259_s3] sm:$0xff] %v186_v6 }
  0x1f   :  { %207 = vst [vmem:[%s259_s3 + $0x8] sm:$0xff] %v203_v7 }

</bundles_post_ra>
